<compile_context>
chip_gen: v7x
topology: tpu7x:2x2x1
jax: 0.10.0
libtpu: 0.0.40
codegen_flags: <defaults>
</compile_context>

<pallas_src>
import math
import functools

import jax
import jax.numpy as jnp
import numpy as np
from jax.experimental import pallas as pl
from jax.experimental.pallas import tpu as pltpu


def _bert_self_attention_kernel(dh, tq,
                                x_ref, bias_ref, hm_ref, w_ref, b_ref,
                                ctx_ref, probs_ref,
                                qkv_scr):
    """Grid = (batch, head, q_tile).  Per step: attention for one (b, h, q-tile)."""
    qt = pl.program_id(2)

    # Fused per-head QKV projection, once per (batch, head) (q_tile is the innermost
    # sequential axis, so the scratch is valid for all subsequent q tiles).
    @pl.when(qt == 0)
    def _():
        qkv = jnp.dot(x_ref[0], w_ref[0],
                      preferred_element_type=jnp.float32) + b_ref[0]   # (S, 3*dh) f32
        qkv_scr[...] = qkv.astype(qkv_scr.dtype)                       # store bf16

    row0 = pl.multiple_of(qt * tq, tq)
    q = qkv_scr[pl.ds(row0, tq), pl.ds(0, dh)]        # (tq, dh) bf16 (scale pre-folded)
    k = qkv_scr[:, pl.ds(dh, dh)]                     # (S,  dh) bf16
    v = qkv_scr[:, pl.ds(2 * dh, dh)]                 # (S,  dh) bf16

    # scores = q @ k^T  (bf16 MXU, f32 accumulation), + additive mask bias
    s = jax.lax.dot_general(q, k, (((1,), (1,)), ((), ())),
                            preferred_element_type=jnp.float32)        # (tq, S)
    s = s + bias_ref[0, pl.ds(row0, tq), :].astype(jnp.float32)

    # softmax in f32; reciprocal of the row sums on the EUP
    m = jnp.max(s, axis=-1, keepdims=True)
    e = jnp.exp(s - m)
    l = jnp.sum(e, axis=-1, keepdims=True)
    p = e * pl.reciprocal(l, approx=True)

    # attention-probs dropout: identity in eval mode
    p = p * hm_ref[0]                                  # head_mask scaling, (1,1) bcast
    probs_ref[0, 0] = p.astype(probs_ref.dtype)

    ctx = jnp.dot(p.astype(jnp.bfloat16), v,
                  preferred_element_type=jnp.float32)  # (tq, dh)
    ctx_ref[0, 0] = ctx.astype(ctx_ref.dtype)


def bert_self_attention(x, attn_mask, head_mask, params, num_heads):
    """x: (B,S,D) f32; attn_mask: (B,S,S) with 1.0 == masked; head_mask: (1,NH).
    params: wq/wk/wv (D,D) with y = x@W, bq/bk/bv (1,D)."""
    B, S, D = x.shape
    assert D % num_heads == 0
    dh = D // num_heads
    inv = 1.0 / math.sqrt(dh)

    # q-tile size: big lane-dense tiles at real sizes, full S at toy sizes.
    tq = S
    for cand in (256, 128):
        if S % cand == 0:
            tq = cand
            break
    n_qt = S // tq

    # --- host-side parameter prep (cheap XLA ops) -------------------------------
    def heads_w(w):   # (D, D) -> (NH, D, dh); output columns are grouped by head
        return jnp.transpose(w.reshape(D, num_heads, dh), (1, 0, 2))

    def heads_b(b):   # (1, D) -> (NH, 1, dh)
        return b.reshape(num_heads, 1, dh)

    # Fused per-head QKV weight/bias; fold 1/sqrt(dh) into the Q part.
    w_fused = jnp.concatenate(
        [heads_w(params["wq"]) * inv, heads_w(params["wk"]), heads_w(params["wv"])],
        axis=-1).astype(jnp.bfloat16)                         # (NH, D, 3*dh)
    b_fused = jnp.concatenate(
        [heads_b(params["bq"]) * inv, heads_b(params["bk"]), heads_b(params["bv"])],
        axis=-1).astype(jnp.float32)                          # (NH, 1, 3*dh)

    # Additive mask bias (large finite negative, not -inf).  For key-only BERT masks
    # this could be shrunk to (B, 1, S) to cut the read by S x.
    bias = jnp.where(attn_mask > 0.5, -1e30, 0.0).astype(jnp.bfloat16)   # (B, S, S)
    hm = head_mask.reshape(num_heads, 1, 1).astype(jnp.float32)
    x_bf = x.astype(jnp.bfloat16)

    kernel = functools.partial(_bert_self_attention_kernel, dh, tq)

    in_specs = [
        pl.BlockSpec((1, S, D), lambda b, h, q: (b, 0, 0)),        # hidden_states (bf16)
        pl.BlockSpec((1, S, S), lambda b, h, q: (b, 0, 0)),        # additive mask bias
        pl.BlockSpec((1, 1, 1), lambda b, h, q: (h, 0, 0)),        # head_mask[h]
        pl.BlockSpec((1, D, 3 * dh), lambda b, h, q: (h, 0, 0)),   # fused QKV weight[h]
        pl.BlockSpec((1, 1, 3 * dh), lambda b, h, q: (h, 0, 0)),   # fused QKV bias[h]
    ]
    out_shape = (jax.ShapeDtypeStruct((B, num_heads, S, dh), x.dtype),   # context (per head)
                 jax.ShapeDtypeStruct((B, num_heads, S, S), x.dtype))    # attention_probs
    out_specs = (pl.BlockSpec((1, 1, tq, dh), lambda b, h, q: (b, h, q, 0)),
                 pl.BlockSpec((1, 1, tq, S), lambda b, h, q: (b, h, q, 0)))

    fn = pl.pallas_call(
        kernel,
        out_shape=out_shape,
        grid_spec=pltpu.PrefetchScalarGridSpec(
            num_scalar_prefetch=0,
            grid=(B, num_heads, n_qt),
            in_specs=in_specs,
            out_specs=out_specs,
            scratch_shapes=[pltpu.VMEM((S, 3 * dh), jnp.bfloat16)]),
        compiler_params=pltpu.CompilerParams(
            dimension_semantics=("parallel", "parallel", "arbitrary"),
            vmem_limit_bytes=32 * 1024 * 1024),
    )

    ctx_bhsd, probs = fn(x_bf, bias, hm, w_fused, b_fused)
    # context_layer.permute(0,2,1,3).contiguous().view(B, S, D)
    ctx = ctx_bhsd.transpose(0, 2, 1, 3).reshape(B, S, D).astype(x.dtype)
    return ctx, probs


def _reference(x, attn_mask, head_mask, params, num_heads):
    """Pure-JAX f32 reference of the PyTorch forward (eval mode)."""
    B, S, D = x.shape
    dh = D // num_heads
    q = x @ params["wq"] + params["bq"][0]
    k = x @ params["wk"] + params["bk"][0]
    v = x @ params["wv"] + params["bv"][0]

    def split(t):
        return t.reshape(B, S, num_heads, dh).transpose(0, 2, 1, 3)

    qh, kh, vh = split(q), split(k), split(v)
    scores = jnp.einsum("bhqd,bhkd->bhqk", qh, kh) / math.sqrt(dh)
    scores = jnp.where(attn_mask[:, None] > 0.5, -jnp.inf, scores)
    probs = jax.nn.softmax(scores, axis=-1)
    probs = probs * head_mask[0][None, :, None, None]
    ctx = jnp.einsum("bhqk,bhkd->bhqd", probs, vh)
    ctx = ctx.transpose(0, 2, 1, 3).reshape(B, S, D)
    return ctx, probs


if __name__ == "__main__":
    B, S, D, NH = 2, 8, 32, 4

    key = jax.random.PRNGKey(0)
    ks = jax.random.split(key, 6)
    scale = 0.05
    params = {
        "wq": scale * jax.random.normal(ks[0], (D, D), jnp.float32),
        "bq": scale * jax.random.normal(ks[1], (1, D), jnp.float32),
        "wk": scale * jax.random.normal(ks[2], (D, D), jnp.float32),
        "bk": scale * jax.random.normal(ks[3], (1, D), jnp.float32),
        "wv": scale * jax.random.normal(ks[4], (D, D), jnp.float32),
        "bv": scale * jax.random.normal(ks[5], (1, D), jnp.float32),
    }

    x = jax.random.normal(jax.random.PRNGKey(42), (B, S, D), jnp.float32)

    # attention mask: 1.0 == masked. Batch 0 masks the last 2 key positions.
    attn_mask = jnp.zeros((B, S, S), jnp.float32)
    attn_mask = attn_mask.at[0, :, S - 2:].set(1.0)

    # per-head head_mask (nontrivial to exercise the multiply)
    head_mask = jnp.array([[1.0, 1.0, 0.5, 1.0]], jnp.float32)

    ctx, probs = bert_self_attention(x, attn_mask, head_mask, params, NH)
    jax.block_until_ready((ctx, probs))

    ref_ctx, ref_probs = _reference(x, attn_mask, head_mask, params, NH)
    # bf16 MXU operands (f32 accumulation) => slightly looser tolerance than pure f32.
    assert np.allclose(np.asarray(ctx), np.asarray(ref_ctx), atol=1e-2, rtol=1e-2)
    assert np.allclose(np.asarray(probs), np.asarray(ref_probs), atol=1e-2, rtol=1e-2)

    print("KERNEL_OK")
</pallas_src>

<mosaic_0001>
module attributes {stable_mosaic.version = 11 : i64} {
  func.func @_bert_self_attention_kernel(%arg0: i32, %arg1: i32, %arg2: i32, %arg3: memref<1x8x32xbf16, #tpu.memory_space<vmem>>, %arg4: memref<1x8x8xbf16, #tpu.memory_space<vmem>>, %arg5: memref<1x1x1xf32, #tpu.memory_space<vmem>>, %arg6: memref<1x32x24xbf16, #tpu.memory_space<vmem>>, %arg7: memref<1x1x24xf32, #tpu.memory_space<vmem>>, %arg8: memref<1x1x8x8xf32, #tpu.memory_space<vmem>>, %arg9: memref<1x1x8x8xf32, #tpu.memory_space<vmem>>, %arg10: memref<8x24xbf16, #tpu.memory_space<vmem>>) attributes {dimension_semantics = [#tpu.dimension_semantics<parallel>, #tpu.dimension_semantics<parallel>, #tpu.dimension_semantics<arbitrary>], iteration_bounds = array<i64: 2, 4, 1>, scalar_prefetch = 0 : i64, scratch_operands = 1 : i64, tpu.core_type = #tpu.core_type<tc>, window_params = [{transform_indices = @transform_0, window_bounds = array<i64: 1, 8, 32>}, {transform_indices = @transform_1, window_bounds = array<i64: 1, 8, 8>}, {transform_indices = @transform_2, window_bounds = array<i64: 1, 1, 1>}, {transform_indices = @transform_3, window_bounds = array<i64: 1, 32, 24>}, {transform_indices = @transform_4, window_bounds = array<i64: 1, 1, 24>}, {transform_indices = @transform_5, window_bounds = array<i64: 1, 1, 8, 8>}, {transform_indices = @transform_6, window_bounds = array<i64: 1, 1, 8, 8>}]} {
    %c0_i32 = arith.constant 0 : i32
    %0 = arith.cmpi eq, %arg2, %c0_i32 : i32
    %1 = arith.extui %0 : i1 to i32
    %c0_i32_0 = arith.constant 0 : i32
    %2 = arith.cmpi ne, %1, %c0_i32_0 : i32
    scf.if %2 {
      %c0_19 = arith.constant 0 : index
      %c0_20 = arith.constant 0 : index
      %c0_21 = arith.constant 0 : index
      %37 = vector.load %arg3[%c0_19, %c0_20, %c0_21] : memref<1x8x32xbf16, #tpu.memory_space<vmem>>, vector<1x8x32xbf16>
      %38 = vector.shape_cast %37 : vector<1x8x32xbf16> to vector<8x32xbf16>
      %c0_22 = arith.constant 0 : index
      %c0_23 = arith.constant 0 : index
      %c0_24 = arith.constant 0 : index
      %39 = vector.load %arg6[%c0_22, %c0_23, %c0_24] : memref<1x32x24xbf16, #tpu.memory_space<vmem>>, vector<1x32x24xbf16>
      %40 = vector.shape_cast %39 : vector<1x32x24xbf16> to vector<32x24xbf16>
      %cst_25 = arith.constant dense<0.000000e+00> : vector<8x24xf32>
      %41 = tpu.matmul %38, %40, %cst_25 {dimension_numbers = #tpu.dot_dimension_numbers<[1], [0], [0], [1], [0, 0, 1, 1], [], []>} : vector<8x32xbf16>, vector<32x24xbf16>, vector<8x24xf32> -> vector<8x24xf32>
      %c0_26 = arith.constant 0 : index
      %c0_27 = arith.constant 0 : index
      %c0_28 = arith.constant 0 : index
      %42 = vector.load %arg7[%c0_26, %c0_27, %c0_28] : memref<1x1x24xf32, #tpu.memory_space<vmem>>, vector<1x1x24xf32>
      %43 = vector.shape_cast %42 : vector<1x1x24xf32> to vector<1x24xf32>
      %44 = vector.broadcast %43 : vector<1x24xf32> to vector<8x24xf32>
      %45 = arith.addf %41, %44 : vector<8x24xf32>
      %46 = arith.truncf %45 : vector<8x24xf32> to vector<8x24xbf16>
      %c0_29 = arith.constant 0 : index
      %c0_30 = arith.constant 0 : index
      %47 = vector.load %arg10[%c0_29, %c0_30] : memref<8x24xbf16, #tpu.memory_space<vmem>>, vector<8x24xbf16>
      tpu.vector_store %arg10[%c0_29, %c0_30], %46 {strides = array<i32>} : memref<8x24xbf16, #tpu.memory_space<vmem>>, vector<8x24xbf16>,
    } else {
    }
    %c8_i32 = arith.constant 8 : i32
    %3 = arith.muli %arg2, %c8_i32 : i32
    %4 = tpu.assume_multiple %3, 8 : i32
    %5 = arith.index_cast %4 : i32 to index
    %c0 = arith.constant 0 : index
    %6 = vector.load %arg10[%5, %c0] : memref<8x24xbf16, #tpu.memory_space<vmem>>, vector<8x8xbf16>
    %c0_1 = arith.constant 0 : index
    %c8 = arith.constant 8 : index
    %7 = vector.load %arg10[%c0_1, %c8] : memref<8x24xbf16, #tpu.memory_space<vmem>>, vector<8x8xbf16>
    %c0_2 = arith.constant 0 : index
    %c16 = arith.constant 16 : index
    %8 = vector.load %arg10[%c0_2, %c16] : memref<8x24xbf16, #tpu.memory_space<vmem>>, vector<8x8xbf16>
    %cst = arith.constant dense<0.000000e+00> : vector<8x8xf32>
    %9 = tpu.matmul %6, %7, %cst {dimension_numbers = #tpu.dot_dimension_numbers<[1], [1], [0], [0], [0, 0, 1, 0], [], []>} : vector<8x8xbf16>, vector<8x8xbf16>, vector<8x8xf32> -> vector<8x8xf32>
    %c0_3 = arith.constant 0 : index
    %10 = arith.index_cast %4 : i32 to index
    %c0_4 = arith.constant 0 : index
    %11 = vector.load %arg4[%c0_3, %10, %c0_4] : memref<1x8x8xbf16, #tpu.memory_space<vmem>>, vector<1x8x8xbf16>
    %12 = vector.shape_cast %11 : vector<1x8x8xbf16> to vector<8x8xbf16>
    %13 = arith.extf %12 : vector<8x8xbf16> to vector<8x8xf32>
    %14 = arith.addf %9, %13 : vector<8x8xf32>
    %cst_5 = arith.constant dense<0xFF800000> : vector<8xf32>
    %15 = vector.multi_reduction <maximumf>, %14, %cst_5 [1] : vector<8x8xf32> to vector<8xf32>
    %16 = vector.shape_cast %15 : vector<8xf32> to vector<8x1xf32>
    %17 = vector.broadcast %16 : vector<8x1xf32> to vector<8x8xf32>
    %18 = arith.subf %14, %17 : vector<8x8xf32>
    %19 = math.exp %18 : vector<8x8xf32>
    %cst_6 = arith.constant dense<0.000000e+00> : vector<8xf32>
    %20 = vector.multi_reduction <add>, %19, %cst_6 [1] : vector<8x8xf32> to vector<8xf32>
    %21 = vector.shape_cast %20 : vector<8xf32> to vector<8x1xf32>
    %22 = tpu.reciprocal %21 {approx = true} : vector<8x1xf32> -> vector<8x1xf32>
    %23 = vector.broadcast %22 : vector<8x1xf32> to vector<8x8xf32>
    %24 = arith.mulf %19, %23 : vector<8x8xf32>
    %c0_7 = arith.constant 0 : index
    %c0_8 = arith.constant 0 : index
    %c0_9 = arith.constant 0 : index
    %25 = vector.load %arg5[%c0_7, %c0_8, %c0_9] : memref<1x1x1xf32, #tpu.memory_space<vmem>>, vector<1x1x1xf32>
    %26 = vector.shape_cast %25 : vector<1x1x1xf32> to vector<1x1xf32>
    %27 = vector.broadcast %26 : vector<1x1xf32> to vector<8x8xf32>
    %28 = arith.mulf %24, %27 : vector<8x8xf32>
    %c0_10 = arith.constant 0 : index
    %c0_11 = arith.constant 0 : index
    %c0_12 = arith.constant 0 : index
    %c0_13 = arith.constant 0 : index
    %29 = vector.load %arg9[%c0_10, %c0_11, %c0_12, %c0_13] : memref<1x1x8x8xf32, #tpu.memory_space<vmem>>, vector<1x1x8x8xf32>
    %30 = vector.shape_cast %29 : vector<1x1x8x8xf32> to vector<8x8xf32>
    %31 = vector.shape_cast %28 : vector<8x8xf32> to vector<1x1x8x8xf32>
    tpu.vector_store %arg9[%c0_10, %c0_11, %c0_12, %c0_13], %31 {strides = array<i32>} : memref<1x1x8x8xf32, #tpu.memory_space<vmem>>, vector<1x1x8x8xf32>,
    %32 = arith.truncf %28 : vector<8x8xf32> to vector<8x8xbf16>
    %cst_14 = arith.constant dense<0.000000e+00> : vector<8x8xf32>
    %33 = tpu.matmul %32, %8, %cst_14 {dimension_numbers = #tpu.dot_dimension_numbers<[1], [0], [0], [1], [0, 0, 1, 1], [], []>} : vector<8x8xbf16>, vector<8x8xbf16>, vector<8x8xf32> -> vector<8x8xf32>
    %c0_15 = arith.constant 0 : index
    %c0_16 = arith.constant 0 : index
    %c0_17 = arith.constant 0 : index
    %c0_18 = arith.constant 0 : index
    %34 = vector.load %arg8[%c0_15, %c0_16, %c0_17, %c0_18] : memref<1x1x8x8xf32, #tpu.memory_space<vmem>>, vector<1x1x8x8xf32>
    %35 = vector.shape_cast %34 : vector<1x1x8x8xf32> to vector<8x8xf32>
    %36 = vector.shape_cast %33 : vector<8x8xf32> to vector<1x1x8x8xf32>
    tpu.vector_store %arg8[%c0_15, %c0_16, %c0_17, %c0_18], %36 {strides = array<i32>} : memref<1x1x8x8xf32, #tpu.memory_space<vmem>>, vector<1x1x8x8xf32>,
    return
  }
  func.func @transform_0(%arg0: i32, %arg1: i32, %arg2: i32) -> (i32, i32, i32) {
    %c0_i32 = arith.constant 0 : i32
    %c0_i32_0 = arith.constant 0 : i32
    %c0_i32_1 = arith.constant 0 : i32
    return %arg0, %c0_i32, %c0_i32_0 : i32, i32, i32
  }
  func.func @transform_1(%arg0: i32, %arg1: i32, %arg2: i32) -> (i32, i32, i32) {
    %c0_i32 = arith.constant 0 : i32
    %c0_i32_0 = arith.constant 0 : i32
    %c0_i32_1 = arith.constant 0 : i32
    return %arg0, %c0_i32, %c0_i32_0 : i32, i32, i32
  }
  func.func @transform_2(%arg0: i32, %arg1: i32, %arg2: i32) -> (i32, i32, i32) {
    %c0_i32 = arith.constant 0 : i32
    %c0_i32_0 = arith.constant 0 : i32
    %c0_i32_1 = arith.constant 0 : i32
    return %arg1, %c0_i32, %c0_i32_0 : i32, i32, i32
  }
  func.func @transform_3(%arg0: i32, %arg1: i32, %arg2: i32) -> (i32, i32, i32) {
    %c0_i32 = arith.constant 0 : i32
    %c0_i32_0 = arith.constant 0 : i32
    %c0_i32_1 = arith.constant 0 : i32
    return %arg1, %c0_i32, %c0_i32_0 : i32, i32, i32
  }
  func.func @transform_4(%arg0: i32, %arg1: i32, %arg2: i32) -> (i32, i32, i32) {
    %c0_i32 = arith.constant 0 : i32
    %c0_i32_0 = arith.constant 0 : i32
    %c0_i32_1 = arith.constant 0 : i32
    return %arg1, %c0_i32, %c0_i32_0 : i32, i32, i32
  }
  func.func @transform_5(%arg0: i32, %arg1: i32, %arg2: i32) -> (i32, i32, i32, i32) {
    %c0_i32 = arith.constant 0 : i32
    %c0_i32_0 = arith.constant 0 : i32
    return %arg0, %arg1, %arg2, %c0_i32 : i32, i32, i32, i32
  }
  func.func @transform_6(%arg0: i32, %arg1: i32, %arg2: i32) -> (i32, i32, i32, i32) {
    %c0_i32 = arith.constant 0 : i32
    %c0_i32_0 = arith.constant 0 : i32
    return %arg0, %arg1, %arg2, %c0_i32 : i32, i32, i32, i32
  }
}

</mosaic_0001>

<bundles_post_ra>
// kernel: tpu_custom_call.1
= control target key start
LH: loop header
LB: loop body
LE: loop exit
PB: predicated region body
PF: predicated region fallthrough
CT: control target
= control target key end

     0   :  { %12 = vsyncpa [#allocation4], 0  ;;  %s1282_s0 = inlined_call_operand.vmem [shape: bf16[2,8,32], index: 0, kind: input, shape index: {}]   ;;  %s1283_s1 = inlined_call_operand.vmem [shape: bf16[2,8,8], index: 1, kind: input, shape index: {}]   ;;  %s1284_s2 = inlined_call_operand.vmem [shape: f32[4,1,1], index: 2, kind: input, shape index: {}]   ;;  %s1285_s3 = inlined_call_operand.vmem [shape: bf16[4,32,24], index: 3, kind: input, shape index: {}]   ;;  %s1286_s4 = inlined_call_operand.vmem [shape: f32[4,1,24], index: 4, kind: input, shape index: {}]   ;;  %s1287_s5 = inlined_call_operand.hbm [shape: f32[2,4,8,8], index: 5, kind: output, shape index: {0}]   ;;  %s1288_s6 = inlined_call_operand.hbm [shape: f32[2,4,8,8], index: 6, kind: output, shape index: {1}]  }
   0x1   :  { %14 = vsyncpa [#allocation4 + $0x1], 0 }
   0x2   :  { %15 = vsyncpa [#allocation6], 0 }
   0x3   :  { %17 = vsyncpa [#allocation6 + $0x1], 0  ;;  %s1073_s21 = smov 0   ;;  %s1075_s22 = smov 0  }
   0x4   :  { %s1077_s23 = smov 0   ;;  %s1079_s24 = smov 0  }
   0x5   :  { %s1081_s25 = smov 0   ;;  %s1083_s26 = smov 0  }
   0x6   :  { %s1085_s27 = smov 0   ;;  %s1087_s28 = smov 0  }
   0x7 LB: > { %s758_s29 = sadd.s32 4294967295, %s1029_s28   ;;  %s759_s30 = sadd.s32 4294967294, %s1029_s28   ;;  %s1029_s28 = sphi %s1087_s28, %s23_s28   ;;  %s1025_s27 = sphi %s1085_s27, %s1301_s27   ;;  %s1021_s26 = sphi %s1083_s26, %s1300_s26   ;;  %s1017_s25 = sphi %s1081_s25, %s1299_s25   ;;  %s1013_s24 = sphi %s1079_s24, %s1298_s24   ;;  %s1009_s23 = sphi %s1077_s23, %s1297_s23   ;;  %s1005_s22 = sphi %s1075_s22, %s1296_s22   ;;  %s1001_s21 = sphi %s1073_s21, %s1295_s21  }
   0x8   : > { %s38_s7 = sadd.s32 1, %s1021_s26  ;;  %s42_s8 = sadd.s32 1, %s1025_s27 }
   0x9   : > { %p40_p0 = scmp.ge.s32.totalorder %s38_s7, 4  ;;  %p193_p1 = scmp.ne.s32.totalorder %s1009_s23, %s1005_s22 }
   0xa   : > { %p194_p2 = scmp.eq.s32.totalorder %s758_s29, 7  ;;  %p199_p5 = scmp.ne.s32.totalorder %s1005_s22, %s1001_s21 }
   0xb   : > { %s1303_s7 = smov (%p40_p0, %s38_s7), 0  ;;  %s1305_s8 = smov (!%p40_p0, %s42_s8), %s1025_s27 }
   0xc   : > { %s177_s9 = ssub.s32 %s1021_s26, %s1303_s7  ;;  %p1124_p3 = por %p194_p2, %p193_p1 }
   0xd   : > { %p44_p4 = scmp.ge.s32.totalorder %s1305_s8, 2  ;;  %p200_p6 = scmp.eq.s32.totalorder %s759_s30, 7 }
   0xe   : > { %p762_p7 = scmp.ge.s32.totalorder %s1029_s28, 1  ;;  %p282_p9 = scmp.lt.s32.totalorder %s1029_s28, 9 }
   0xf   : > { %s1307_s8 = smov (%p44_p4, %s1305_s8), 0  ;;  %p1133_p8 = por %p200_p6, %p199_p5 }
  0x10   : > { %s176_s12 = ssub.s32 %s1025_s27, %s1307_s8  ;;  %s183_s13 = sadd.s32 1, %s1009_s23 }
  0x11   : > { %s178_s14 = sor.u32 %s177_s9, %s176_s12  ;;  %p283_p10 = pnand %p762_p7, %p282_p9 }
  0x12   : > { %p181_p11 = scmp.eq.s32.totalorder %s178_s14, 0  ;;  %p339_p12 = scmp.lt.s32.totalorder (!%p283_p10), %s1013_s24, 3  ;;  %v1031_v0 = vmov (!%p283_p10), 0.0   ;;  %vm1032_vm0 = vmmov (!%p283_p10), 0   ;;  %vm379_vm1 = vcmask (!%p283_p10), 261120   ;;  %vm424_vm2 = vcmask (!%p283_p10), 191488  }
  0x13   : > { %286 = sbr.rel (%p283_p10) target bundleno = 1144 (0x478), region = 40  ;;  %p331_p13 = scmp.lt.s32.totalorder (!%p283_p10), %s1017_s25, 1  ;;  %793 = vmatprep.subr.bf16.mxu0 (!%p283_p10), %v1031_v0  ;;  %797 = vmatprep.mubr.msk.bf16.mxu0 (!%p283_p10), %vm1032_vm0, %v1031_v0  ;;  %vm442_vm3 = vcmask (!%p283_p10), 64512   ;;  %v1034_v15 = vmov (!%p283_p10), 0   ;;  %vm518_vm4 = vcmask (!%p283_p10), 1043456  }
  0x14   : > { %s1142_s15 = scalar_select %p181_p11, %s1009_s23, %s183_s13  }
  0x15   : > { %801 = vmatprep.subr.bf16.mxu1 (!%p283_p10), %v1031_v0  ;;  %803 = vmatprep.mubr.msk.bf16.mxu1 (!%p283_p10), %vm1032_vm0, %v1031_v0  ;;  %s1033_s20 = smov (!%p283_p10), 120  }
  0x16   : > { %894 = vset.pattern.permute.xlu1 (!%p283_p10), %v1034_v15  ;;  %895 = vset.pattern.permute.xlu0 (!%p283_p10), %v1034_v15 }
  0x1a   : > { %s1148_s16 = scalar_select %p339_p12, %s1013_s24, 3 }
  0x1b   : > { %s1152_s17 = scalar_select %p331_p13, %s1017_s25, 1 }
  0x1c   : > { %s785_s18 = sshll.u32 %s1148_s16, 4  ;;  %s341_s12 = scalar_lea.vmem %s1284_s2, %s1148_s16 }
  0x1d   : > { %s346_s29 = scalar_lea.vmem %s1285_s3, %s785_s18  ;;  %s765_s30 = sshll.u32 %s1152_s17, 2  ;;  %v775_v16 = vld [vmem:[%s341_s12] ss:$0 sm:$0xff] }
  0x1e   : > { %v896_v1 = vld [vmem:[%s346_s29] sm:$0xff]   ;;  %v897_v2 = vld [vmem:[%s346_s29 + $0x8] sm:$0xff]   ;;  %s334_s13 = scalar_lea.vmem %s1282_s0, %s765_s30  ;;  %s349_s18 = scalar_lea.vmem %s1286_s4, %s1148_s16  ;;  %507 = vperm.xlu1 %894, %v775_v16  }
  0x1f   : > { %794 = vmatpush3.bf16.msra.mxu0 %v896_v1  ;;  %v355_v3 = vld [vmem:[%s334_s13] sm:$0xf]  ;;  %s338_s19 = scalar_lea.vmem %s1283_s1, %s765_s30  ;;  %s1035_s16 = smov 112  }
  0x20   : > { %795 = vmatprep.subr.bf16.mxu0 %v1031_v0  ;;  %v769_v4 = vld [vmem:[%s349_s18] ss:$0 sm:$0xff]  ;;  %s1183_s17 = sand.u32 1, %s1005_s22  }
  0x21   : > { %v435_v17 = vld [vmem:[%s338_s19] sm:$0xf]  ;;  %s1289_s30 = sshll.u32 %s1183_s17, 3 }
  0x22   : > { %v436_v18 = vunpack.c.l.bf16 %v435_v17  ;;  %s330_s18 = scalar_lea.vmem [#allocation5], %s1289_s30 }
  0x23   : > { %796 = vmatpush3.bf16.msra.mxu0 %v897_v2  ;;  %s601_s19 = sshll.u32 %s330_s18, 4  ;;  %s602_s19 = int_to_ptr.vmem [resolvable:$true] %s601_s19 }
  0x24   : > { %807 = vmatprep.subr.bf16.mxu0 %v1031_v0  ;;  %s903_s30 = scalar_lea.vmem %s602_s19, 128 }
  0x25   : > { %p904_p0 = scmp.ne.s32.totalorder %s602_s19, %s903_s30 }
  0x26   : > { %798 = vmatmul.mubr.msk.bf16.vlgmr.msra.gmra.mrb[0].mxu0 %vm379_vm1, %v355_v3 }
  0x27   : > { %809 = vmatprep.mubr.msk.bf16.mxu0 %vm1032_vm0, %v1031_v0  ;;  %p905_p1 = pnand %p904_p0, %p1124_p3 }
  0x29   : > { %p906_p2 = pneg %p905_p1 }
  0x9d   : > { %v508_v30 = vpop.permute.xlu1 %507 }
  0xf9   : > { %v417_v5 = vpop.f32.mrb[0].mxu0 }
  0xfa   : > { %v418_v6 = vadd.f32 %v769_v4, %v417_v5  ;;  %v799_v7 = vpop.f32.mrb[1].mxu0 }
  0xfb   : > { %v420_v8 = vpop.f32.mrb[2].mxu0 }
  0xfc   : > { %v423_v9 = vpack.c.bf16 %v418_v6, %v418_v6  ;;  %v800_v10 = vpop.f32.mrb[3].mxu0 }
  0xfe   : > { %425 = vst.msk [vmem:[#allocation2] sm:$0xf] %vm424_vm2, %v423_v9 }
 0x105   : > { %v898_v11 = vld [vmem:[#allocation2] ss:$0 sps:$4 sm:$0xff]  }
 0x106   : > { %440 = vrot.lane.b32.xlu0 %v898_v11, %s1033_s20  ;;  %v431_v14 = vld [vmem:[#allocation2] sm:$0xf]  ;;  %s779_s20 = sshll.u32 %s1017_s25, 2  ;;  %s1036_s25 = smov [#allocation5]  }
 0x107   : > { %s1192_s29 = sadd.s32 %s1013_s24, %s779_s20  ;;  %s907_s24 = sshll.u32 %s1036_s25, 4  ;;  %s908_s24 = int_to_ptr.vmem [resolvable:$false] %s907_s24 }
 0x108   : > { %s1290_s9 = sshll.u32 %s1192_s29, 7  ;;  %s909_s20 = scalar_lea.vmem %s908_s24, 256 }
 0x109   : > { %s1200_s14 = scalar_lea.hbm %s1288_s6, %s1290_s9  ;;  %p910_p4 = scmp.lt.s32.totalorder %s602_s19, %s908_s24 }
 0x10a   : > { %p911_p5 = scmp.lt.s32.totalorder %s909_s20, %s903_s30 }
 0x10c   : > { %p912_p6 = por %p911_p5, %p910_p4 }
 0x10e   : > { %p913_p7 = pnand %p912_p6, %p906_p2 }
 0x178   : > { %v441_v12 = vpop.permute.xlu0 %440 }
 0x179   : > { %v447_v13 = vsel %vm442_vm3, %v441_v12, 0 }
 0x17a   : > { %802 = vmatpush3.bf16.xpose.msra.mxu1 %v447_v13 }
 0x181   : > { %804 = vmatmul.mubr.msk.bf16.vlgmr.msra.gmra.mrb[0].mxu1 %vm442_vm3, %v431_v14 }
 0x254   : > { %v483_v19 = vpop.f32.mrb[0].mxu1 }
 0x255   : > { %v484_v20 = vadd.f32 %v483_v19, %v436_v18  ;;  %v805_v21 = vpop.f32.mrb[1].mxu1 }
 0x256   : > { %v486_v22 = vpop.f32.mrb[2].mxu1 }
 0x257   : > { %v806_v23 = vpop.f32.mrb[3].mxu1  ;;  %v489_v24 = vsel %vm442_vm3, %v484_v20, -inf }
 0x258   : > { %490 = vmax.xlane.f32.xlu0 %v489_v24 }
 0x2e5   : > { %v491_v25 = vpop.xlane.xlu0 %490 }
 0x2e6   : > { %v492_v26 = vsub.f32 %v484_v20, %v491_v25 }
 0x2e8   : > { %v493_v27 = vmul.f32 1.442695, %v492_v26 }
 0x2ea   : > { %899 = vpow2.f32 %v493_v27 }
 0x2f4   : > { %v900_v28 = vpop.eup %899 }
 0x2f5   : > { %v495_v29 = vsel %vm442_vm3, %v900_v28, 0.0 }
 0x2f6   : > { %496 = vadd.xlane.f32.xlu1 %v495_v29 }
 0x307   : > { %513 = vrot.lane.b32.xlu1 %v898_v11, %s1035_s16  ;;  %s569_s16 = scalar_lea.sflag [#allocation6], %s1183_s17 }
 0x383   : > { %v497_v31 = vpop.xlane.xlu1 %496 }
 0x384   : > { %901 = vrcp.f32 %v497_v31 }
 0x387   : > { %v514_v32 = vpop.permute.xlu1 %513 }
 0x388   : > { %v520_v33 = vsel %vm518_vm4, %v514_v32, 0 }
 0x389   : > { %808 = vmatpush3.bf16.msra.mxu0 %v520_v33 }
 0x38e   : > { %v902_v34 = vpop.eup %901 }
 0x38f   : > { %v499_v35 = vmul.f32 %v902_v34, %v900_v28 }
 0x391   : > { %v510_v36 = vmul.f32 %v508_v30, %v499_v35 }
 0x393   : > { %v512_v37 = vpack.c.bf16 %v510_v36, %v510_v36  ;;  %511 = vst.msk [vmem:[%s330_s18] sm:$0xff] %vm442_vm3, %v510_v36 }
 0x395   : > { %810 = vmatmul.mubr.msk.bf16.vlgmr.msra.gmra.mrb[4].mxu0 %vm442_vm3, %v512_v37 }
 0x396   : > { %916 = shalt.err (!%p913_p7)
}
 0x397   : > { %s917_s18 = scalar_lea.hbm %s1200_s14, 128  ;;  %s921_s25 = scalar_lea.hbm %s1288_s6, 1024 }
 0x398   : > { %p918_p9 = scmp.ne.s32.totalorder %s1200_s14, %s917_s18  ;;  %p922_p12 = scmp.lt.u32.totalorder %s1200_s14, %s1288_s6 }
 0x399   : > { %p923_p13 = scmp.lt.u32.totalorder %s921_s25, %s917_s18  ;;  %p925_p1 = scmp.lt.u32.totalorder %s917_s18, %s1200_s14 }
 0x39a   : > { %p919_p10 = pnand %p918_p9, %p1124_p3 }
 0x39b   : > { %p924_p0 = por %p923_p13, %p922_p12 }
 0x39c   : > { %p920_p11 = pneg %p919_p10 }
 0x39d   : > { %p926_p2 = por %p925_p1, %p924_p0 }
 0x39f   : > { %p927_p4 = pnand %p926_p2, %p920_p11 }
 0x3a1   : > { %930 = shalt.err (!%p927_p4)
}
 0x3a2   : > { %814 = dma.vmem_to_hbm [thread:$0]  (%p1124_p3), %s602_s19, 128, %s1200_s14, %s569_s16  }
 0x3a3   : > { %s1293_s30 = sshll.u32 %s1183_s17, 3  ;;  %s1294_s13 = sshll.u32 %s1192_s29, 7 }
 0x3a4   : > { %s323_s20 = scalar_lea.vmem [#allocation3], %s1293_s30  ;;  %s1227_s25 = scalar_lea.hbm %s1287_s5, %s1294_s13 }
 0x3a5   : > { %s585_s12 = sshll.u32 %s323_s20, 4  ;;  %s564_s14 = scalar_lea.sflag [#allocation4], %s1183_s17  ;;  %s1229_s12 = int_to_ptr.vmem [resolvable:$true] %s585_s12 }
 0x3a6   : > { %s931_s19 = scalar_lea.vmem %s1229_s12, 128  ;;  %s1037_s29 = smov [#allocation3]  }
 0x3a7   : > { %p932_p5 = scmp.ne.s32.totalorder %s1229_s12, %s931_s19  ;;  %s935_s16 = sshll.u32 %s1037_s29, 4  ;;  %s936_s16 = int_to_ptr.vmem [resolvable:$false] %s935_s16 }
 0x3a8   : > { %s937_s18 = scalar_lea.vmem %s936_s16, 256  ;;  %p938_p9 = scmp.lt.s32.totalorder %s1229_s12, %s936_s16 }
 0x3a9   : > { %p933_p6 = pnand %p932_p5, %p1124_p3  ;;  %p939_p10 = scmp.lt.s32.totalorder %s937_s18, %s931_s19 }
 0x3ab   : > { %p934_p7 = pneg %p933_p6  ;;  %p940_p11 = por %p939_p10, %p938_p9 }
 0x3ad   : > { %p941_p12 = pnand %p940_p11, %p934_p7 }
 0x468   : > { %v556_v38 = vpop.f32.mrb[4].mxu0 }
 0x469   : > { %562 = vst.msk [vmem:[%s323_s20] sm:$0xff] %vm442_vm3, %v556_v38  ;;  %v811_v39 = vpop.f32.mrb[5].mxu0 }
 0x46a   : > { %v559_v40 = vpop.f32.mrb[6].mxu0 }
 0x46b   : > { %944 = shalt.err (!%p941_p12)
}
 0x46c   : > { %s945_s17 = scalar_lea.hbm %s1227_s25, 128  ;;  %s949_s13 = scalar_lea.hbm %s1287_s5, 1024 }
 0x46d   : > { %p946_p13 = scmp.ne.s32.totalorder %s1227_s25, %s945_s17  ;;  %p950_p2 = scmp.lt.u32.totalorder %s1227_s25, %s1287_s5 }
 0x46e   : > { %p951_p4 = scmp.lt.u32.totalorder %s949_s13, %s945_s17  ;;  %p953_p6 = scmp.lt.u32.totalorder %s945_s17, %s1227_s25 }
 0x46f   : > { %p947_p0 = pnand %p946_p13, %p1124_p3 }
 0x470   : > { %p952_p5 = por %p951_p4, %p950_p2 }
 0x471   : > { %p948_p1 = pneg %p947_p0 }
 0x472   : > { %p954_p7 = por %p953_p6, %p952_p5 }
 0x474   : > { %p955_p9 = pnand %p954_p7, %p948_p1 }
 0x476   : > { %958 = shalt.err (!%p955_p9)
}
 0x477   : > { %813 = dma.vmem_to_hbm [thread:$0]  (%p1124_p3), %s1229_s12, 128, %s1227_s25, %s564_s14   ;;  %v812_v41 = vpop.f32.mrb[7].mxu0 }
 0x478 PF: > { %p824_p10 = scmp.ge.s32.totalorder %s1029_s28, 2  ;;  %s613_s19 = sand.u32 1, %s1001_s21  }
 0x479   : > { %s614_s29 = scalar_lea.sflag [#allocation4], %s613_s19 }
 0x47a   : > { %p818_p11 = pnand %p824_p10, %p1133_p8 }
 0x47c   : > { %992 = dma.done.wait (!%p818_p11), %s614_s29, 128  }
 0x47d   : > { %994 = vsyncadd (!%p818_p11), %s614_s29, 4294967168  ;;  %s623_s16 = scalar_lea.sflag [#allocation6], %s613_s19 }
 0x47e   : > { %996 = dma.done.wait (!%p818_p11), %s623_s16, 128  }
 0x47f   : > { %998 = vsyncadd (!%p818_p11), %s623_s16, 4294967168  ;;  %s23_s28 = sadd.s32 1, %s1029_s28   ;;  %s1295_s21 = smov %s1005_s22 }
 0x480   : > { %p20_p12 = scmp.ge.s32.totalorder %s23_s28, 10   ;;  %s1296_s22 = smov %s1009_s23 }
 0x481   : > { %s1297_s23 = smov %s1142_s15  ;;  %s1298_s24 = smov %s1021_s26 }
 0x482   : > { %s1299_s25 = smov %s1025_s27  ;;  %s1300_s26 = smov %s1303_s7 }
 0x483   : > { %s1301_s27 = smov %s1307_s8  ;;  %22 = sbr.rel (!%p20_p12) target bundleno = 7 (0x7), region = 110 }
 0x48a   :  { %628 = vsyncpa [#allocation4], 1 }
 0x48b   :  { %630 = vsyncpa [#allocation4 + $0x1], 1 }
 0x48c   :  { %631 = vsyncpa [#allocation6], 1 }
 0x48d   :  { %633 = vsyncpa [#allocation6 + $0x1], 1 }

</bundles_post_ra>
